<compile_context>
chip_gen: v7x
topology: tpu7x:2x2x1
jax: 0.10.0
libtpu: 0.0.40
codegen_flags: <defaults>
</compile_context>

<pallas_src>
import functools
import math

import jax
import jax.numpy as jnp
from jax.experimental import pallas as pl
from jax.experimental.pallas import tpu as pltpu


def _round_up(v, m):
    return ((v + m - 1) // m) * m


def _pad_to(arr, shape):
    pads = [(0, s - d) for d, s in zip(arr.shape, shape)]
    if all(p == (0, 0) for p in pads):
        return arr
    return jnp.pad(arr, pads)


def _moe_expert_kernel(x_ref, gw_ref, w1_ref, w3_ref, w2_ref, o_ref, acc_ref):
    # grid = (token_tile i [parallel], expert e [arbitrary], d_ff chunk k [arbitrary])
    e = pl.program_id(1)
    k = pl.program_id(2)
    n_e = pl.num_programs(1)
    n_k = pl.num_programs(2)

    @pl.when(jnp.logical_and(e == 0, k == 0))
    def _init():
        acc_ref[...] = jnp.zeros_like(acc_ref)

    x = x_ref[...]                       # (tm, d_model_p)
    w1 = w1_ref[0]                       # (d_model_p, tk_ff)
    w3 = w3_ref[0]                       # (d_model_p, tk_ff)
    w2 = w2_ref[0]                       # (tk_ff, d_model_p)
    gw = gw_ref[0]                       # (tm, 1) routing weight of expert e (f32)

    h1 = jnp.dot(x, w1, preferred_element_type=jnp.float32)
    gate = h1 * jax.nn.sigmoid(h1)       # silu in f32 (VPU/EUP)
    up = jnp.dot(x, w3, preferred_element_type=jnp.float32)
    # dropout == identity (eval); fold per-token routing weight in before W2.
    hidden = (gate * up) * gw

    acc_ref[...] += jnp.dot(hidden.astype(w2.dtype), w2,
                            preferred_element_type=jnp.float32)

    @pl.when(jnp.logical_and(e == n_e - 1, k == n_k - 1))
    def _finalize():
        o_ref[...] = acc_ref[...].astype(o_ref.dtype)


def _expert_ffn(x_flat, combine, w1, w3, w2, *, tm):
    """sum_e combine[:, e] * SwiGLU_e(x) for every token. Returns [tokens, d_model]."""
    tokens, d_model = x_flat.shape
    n_experts, _, d_ff = w1.shape
    itemsize = jnp.dtype(x_flat.dtype).itemsize

    # Lane-dense padding: d_model / d_ff padded to multiples of 128, tokens to tile size.
    d_model_p = _round_up(d_model, 128)
    d_ff_p = _round_up(d_ff, 128)
    tokens_p = _round_up(max(tokens, 1), tm)
    tk_ff = 512 if d_ff_p % 512 == 0 else (256 if d_ff_p % 256 == 0 else 128)

    x_p = _pad_to(x_flat, (tokens_p, d_model_p))
    w1_p = _pad_to(w1, (n_experts, d_model_p, d_ff_p))
    w3_p = _pad_to(w3, (n_experts, d_model_p, d_ff_p))
    w2_p = _pad_to(w2, (n_experts, d_ff_p, d_model_p))
    # combine: [tokens, n_experts] -> [n_experts, tokens_p, 1]; padded tokens get weight 0.
    gw_p = _pad_to(combine.T.astype(jnp.float32)[..., None], (n_experts, tokens_p, 1))

    grid = (tokens_p // tm, n_experts, d_ff_p // tk_ff)

    # Scoped-VMEM budget: double-buffered input/output tiles + f32 accumulator.
    tile_bytes = (
        2 * tm * d_model_p * itemsize                 # x tile
        + 2 * tm * 4                                  # routing weights (f32)
        + 2 * 2 * d_model_p * tk_ff * itemsize        # W1 + W3 chunks
        + 2 * tk_ff * d_model_p * itemsize            # W2 chunk
        + 2 * tm * d_model_p * itemsize               # out tile
        + tm * d_model_p * 4                          # acc scratch
    )
    vmem_limit = int(min(max(2 * tile_bytes + (4 << 20), 32 << 20), 100 << 20))

    n_token_tiles = tokens_p // tm
    flops = 2 * tokens_p * d_model_p * d_ff_p * 3 * n_experts
    transcendentals = tokens_p * d_ff_p * n_experts
    bytes_accessed = (
        (w1_p.size + w3_p.size + w2_p.size) * itemsize * n_token_tiles
        + x_p.size * itemsize + tokens_p * d_model_p * itemsize + gw_p.size * 4
    )

    out_p = pl.pallas_call(
        _moe_expert_kernel,
        out_shape=jax.ShapeDtypeStruct((tokens_p, d_model_p), x_flat.dtype),
        grid_spec=pltpu.PrefetchScalarGridSpec(
            num_scalar_prefetch=0,
            grid=grid,
            in_specs=[
                pl.BlockSpec((tm, d_model_p), lambda i, e, k: (i, 0)),           # x tile
                pl.BlockSpec((1, tm, 1), lambda i, e, k: (e, i, 0)),             # routing w
                pl.BlockSpec((1, d_model_p, tk_ff), lambda i, e, k: (e, 0, k)),  # W1 chunk
                pl.BlockSpec((1, d_model_p, tk_ff), lambda i, e, k: (e, 0, k)),  # W3 chunk
                pl.BlockSpec((1, tk_ff, d_model_p), lambda i, e, k: (e, k, 0)),  # W2 chunk
            ],
            out_specs=pl.BlockSpec((tm, d_model_p), lambda i, e, k: (i, 0)),
            scratch_shapes=[pltpu.VMEM((tm, d_model_p), jnp.float32)],
        ),
        compiler_params=pltpu.CompilerParams(
            dimension_semantics=("parallel", "arbitrary", "arbitrary"),
            vmem_limit_bytes=vmem_limit,
        ),
        cost_estimate=pl.CostEstimate(
            flops=flops, transcendentals=transcendentals,
            bytes_accessed=bytes_accessed),
    )(x_p, gw_p, w1_p, w3_p, w2_p)

    return out_p[:tokens, :d_model]


@functools.partial(jax.jit, static_argnames=("top_k", "tm"))
def moe_forward(x, w_router, w1, w3, w2, load_balance_loss_coef, *, top_k=2, tm=128):
    """x: [B, T, d_model] -> (output [B, T, d_model], load_balance_loss scalar)."""
    B, T, C = x.shape
    x_flat = x.reshape(-1, C)
    n_experts = w_router.shape[1]

    # --- router + top-k gating (plain JAX: tiny compute, data-dependent top-k) ---
    router_logits = jnp.dot(x_flat, w_router,
                            preferred_element_type=jnp.float32)       # (tokens, n_experts)
    topk_logits, topk_idx = jax.lax.top_k(router_logits, top_k)
    topk_probs = jax.nn.softmax(topk_logits, axis=-1)
    one_hot = jax.nn.one_hot(topk_idx, n_experts, dtype=topk_probs.dtype)  # (t, k, e)
    combine = jnp.einsum("ts,tse->te", topk_probs, one_hot)            # (tokens, n_experts)

    # --- expert compute (Pallas kernel) ---
    out_flat = _expert_ffn(x_flat, combine, w1, w3, w2, tm=tm)

    # --- load-balance auxiliary loss ---
    router_probs = jax.nn.softmax(router_logits, axis=-1)
    expert_probs = router_probs.mean(axis=0)
    aux_loss = n_experts * jnp.sum(expert_probs * expert_probs)
    return out_flat.reshape(B, T, C), load_balance_loss_coef * aux_loss


def _reference(x, w_router, w1, w3, w2, coef, top_k):
    """Pure-JAX mirror of the torch MixtureOfExperts.forward (eval mode)."""
    B, T, C = x.shape
    n_experts = w_router.shape[1]
    x_flat = x.reshape(-1, C).astype(jnp.float32)
    logits = jnp.dot(x_flat, w_router.astype(jnp.float32),
                     preferred_element_type=jnp.float32)
    topk_logits, topk_idx = jax.lax.top_k(logits, top_k)
    topk_probs = jax.nn.softmax(topk_logits, axis=-1)
    one_hot = jax.nn.one_hot(topk_idx, n_experts, dtype=jnp.float32)
    combine = jnp.einsum("ts,tse->te", topk_probs, one_hot)
    out = jnp.zeros_like(x_flat)
    for e in range(n_experts):
        h1 = x_flat @ w1[e].astype(jnp.float32)
        gate = h1 * jax.nn.sigmoid(h1)
        up = x_flat @ w3[e].astype(jnp.float32)
        expert_out = (gate * up) @ w2[e].astype(jnp.float32)
        out = out + expert_out * combine[:, e:e + 1]
    probs = jax.nn.softmax(logits, axis=-1)
    aux = n_experts * jnp.sum(probs.mean(axis=0) ** 2)
    return out.reshape(B, T, C), coef * aux


if __name__ == "__main__":
    # Small shapes consistent with the module: B=2, T=8, d_model=32, d_ff=4*d_model,
    # n_experts=4, top_k=2.
    batch, seq, d_model, n_experts, top_k = 2, 8, 32, 4, 2
    d_ff = 4 * d_model
    coef = 0.01

    key = jax.random.PRNGKey(0)
    kx, kr, k1, k2, k3 = jax.random.split(key, 5)

    x = jax.random.normal(kx, (batch, seq, d_model), dtype=jnp.float32)
    s_in = 1.0 / math.sqrt(d_model)
    s_ff = 1.0 / math.sqrt(d_ff)
    # torch nn.Linear(in, out).weight has shape (out, in); we store the transpose
    # (stacked over experts) so the kernel computes x @ W.
    w_router = jax.random.uniform(kr, (d_model, n_experts), jnp.float32, -s_in, s_in)
    w1 = jax.random.uniform(k1, (n_experts, d_model, d_ff), jnp.float32, -s_in, s_in)
    w3 = jax.random.uniform(k3, (n_experts, d_model, d_ff), jnp.float32, -s_in, s_in)
    w2 = jax.random.uniform(k2, (n_experts, d_ff, d_model), jnp.float32, -s_ff, s_ff)

    out, loss = moe_forward(x, w_router, w1, w3, w2, coef, top_k=top_k, tm=128)
    out = jax.block_until_ready(out)
    loss = jax.block_until_ready(loss)

    ref_out, ref_loss = _reference(x, w_router, w1, w3, w2, coef, top_k)
    assert out.shape == (batch, seq, d_model)
    assert jnp.allclose(out, ref_out, atol=1e-4, rtol=1e-4), "output mismatch vs reference"
    assert jnp.allclose(loss, ref_loss, atol=1e-5), "load-balance loss mismatch"

    print("KERNEL_OK")
</pallas_src>

<mosaic_0001>
module attributes {stable_mosaic.version = 11 : i64} {
  func.func @_moe_expert_kernel(%arg0: i32, %arg1: i32, %arg2: i32, %arg3: memref<128x128xf32, #tpu.memory_space<vmem>>, %arg4: memref<1x128x1xf32, #tpu.memory_space<vmem>>, %arg5: memref<1x128x128xf32, #tpu.memory_space<vmem>>, %arg6: memref<1x128x128xf32, #tpu.memory_space<vmem>>, %arg7: memref<1x128x128xf32, #tpu.memory_space<vmem>>, %arg8: memref<128x128xf32, #tpu.memory_space<vmem>>, %arg9: memref<128x128xf32, #tpu.memory_space<vmem>>) attributes {dimension_semantics = [#tpu.dimension_semantics<parallel>, #tpu.dimension_semantics<arbitrary>, #tpu.dimension_semantics<arbitrary>], iteration_bounds = array<i64: 1, 4, 1>, scalar_prefetch = 0 : i64, scratch_operands = 1 : i64, tpu.core_type = #tpu.core_type<tc>, window_params = [{transform_indices = @transform_0, window_bounds = array<i64: 128, 128>}, {transform_indices = @transform_1, window_bounds = array<i64: 1, 128, 1>}, {transform_indices = @transform_2, window_bounds = array<i64: 1, 128, 128>}, {transform_indices = @transform_3, window_bounds = array<i64: 1, 128, 128>}, {transform_indices = @transform_4, window_bounds = array<i64: 1, 128, 128>}, {transform_indices = @transform_5, window_bounds = array<i64: 128, 128>}]} {
    %c0_i32 = arith.constant 0 : i32
    %0 = arith.cmpi eq, %arg1, %c0_i32 : i32
    %c0_i32_0 = arith.constant 0 : i32
    %1 = arith.cmpi eq, %arg2, %c0_i32_0 : i32
    %2 = arith.andi %0, %1 : i1
    %3 = arith.extui %2 : i1 to i32
    %c0_i32_1 = arith.constant 0 : i32
    %4 = arith.cmpi ne, %3, %c0_i32_1 : i32
    scf.if %4 {
      %cst_24 = arith.constant 0.000000e+00 : f32
      %34 = vector.broadcast %cst_24 : f32 to vector<128x128xf32>
      %c0_25 = arith.constant 0 : index
      %c0_26 = arith.constant 0 : index
      %35 = vector.load %arg9[%c0_25, %c0_26] : memref<128x128xf32, #tpu.memory_space<vmem>>, vector<128x128xf32>
      tpu.vector_store %arg9[%c0_25, %c0_26], %34 {strides = array<i32>} : memref<128x128xf32, #tpu.memory_space<vmem>>, vector<128x128xf32>,
    } else {
    }
    %c0 = arith.constant 0 : index
    %c0_2 = arith.constant 0 : index
    %5 = vector.load %arg3[%c0, %c0_2] : memref<128x128xf32, #tpu.memory_space<vmem>>, vector<128x128xf32>
    %c0_3 = arith.constant 0 : index
    %c0_4 = arith.constant 0 : index
    %c0_5 = arith.constant 0 : index
    %6 = vector.load %arg5[%c0_3, %c0_4, %c0_5] : memref<1x128x128xf32, #tpu.memory_space<vmem>>, vector<1x128x128xf32>
    %7 = vector.shape_cast %6 : vector<1x128x128xf32> to vector<128x128xf32>
    %c0_6 = arith.constant 0 : index
    %c0_7 = arith.constant 0 : index
    %c0_8 = arith.constant 0 : index
    %8 = vector.load %arg6[%c0_6, %c0_7, %c0_8] : memref<1x128x128xf32, #tpu.memory_space<vmem>>, vector<1x128x128xf32>
    %9 = vector.shape_cast %8 : vector<1x128x128xf32> to vector<128x128xf32>
    %c0_9 = arith.constant 0 : index
    %c0_10 = arith.constant 0 : index
    %c0_11 = arith.constant 0 : index
    %10 = vector.load %arg7[%c0_9, %c0_10, %c0_11] : memref<1x128x128xf32, #tpu.memory_space<vmem>>, vector<1x128x128xf32>
    %11 = vector.shape_cast %10 : vector<1x128x128xf32> to vector<128x128xf32>
    %c0_12 = arith.constant 0 : index
    %c0_13 = arith.constant 0 : index
    %c0_14 = arith.constant 0 : index
    %12 = vector.load %arg4[%c0_12, %c0_13, %c0_14] : memref<1x128x1xf32, #tpu.memory_space<vmem>>, vector<1x128x1xf32>
    %13 = vector.shape_cast %12 : vector<1x128x1xf32> to vector<128x1xf32>
    %cst = arith.constant dense<0.000000e+00> : vector<128x128xf32>
    %14 = tpu.matmul %5, %7, %cst {dimension_numbers = #tpu.dot_dimension_numbers<[1], [0], [0], [1], [0, 0, 1, 1], [], []>} : vector<128x128xf32>, vector<128x128xf32>, vector<128x128xf32> -> vector<128x128xf32>
    %15 = arith.negf %14 : vector<128x128xf32>
    %16 = math.exp %15 : vector<128x128xf32>
    %cst_15 = arith.constant 1.000000e+00 : f32
    %17 = vector.broadcast %cst_15 : f32 to vector<128x128xf32>
    %18 = arith.addf %17, %16 : vector<128x128xf32>
    %19 = arith.divf %17, %18 : vector<128x128xf32>
    %20 = arith.mulf %14, %19 : vector<128x128xf32>
    %cst_16 = arith.constant dense<0.000000e+00> : vector<128x128xf32>
    %21 = tpu.matmul %5, %9, %cst_16 {dimension_numbers = #tpu.dot_dimension_numbers<[1], [0], [0], [1], [0, 0, 1, 1], [], []>} : vector<128x128xf32>, vector<128x128xf32>, vector<128x128xf32> -> vector<128x128xf32>
    %22 = arith.mulf %20, %21 : vector<128x128xf32>
    %23 = vector.broadcast %13 : vector<128x1xf32> to vector<128x128xf32>
    %24 = arith.mulf %22, %23 : vector<128x128xf32>
    %c0_17 = arith.constant 0 : index
    %c0_18 = arith.constant 0 : index
    %25 = vector.load %arg9[%c0_17, %c0_18] : memref<128x128xf32, #tpu.memory_space<vmem>>, vector<128x128xf32>
    %cst_19 = arith.constant dense<0.000000e+00> : vector<128x128xf32>
    %26 = tpu.matmul %24, %11, %cst_19 {dimension_numbers = #tpu.dot_dimension_numbers<[1], [0], [0], [1], [0, 0, 1, 1], [], []>} : vector<128x128xf32>, vector<128x128xf32>, vector<128x128xf32> -> vector<128x128xf32>
    %27 = arith.addf %25, %26 : vector<128x128xf32>
    %c0_20 = arith.constant 0 : index
    %c0_21 = arith.constant 0 : index
    %28 = vector.load %arg9[%c0_20, %c0_21] : memref<128x128xf32, #tpu.memory_space<vmem>>, vector<128x128xf32>
    tpu.vector_store %arg9[%c0_20, %c0_21], %27 {strides = array<i32>} : memref<128x128xf32, #tpu.memory_space<vmem>>, vector<128x128xf32>,
    %c3_i32 = arith.constant 3 : i32
    %29 = arith.cmpi eq, %arg1, %c3_i32 : i32
    %c0_i32_22 = arith.constant 0 : i32
    %30 = arith.cmpi eq, %arg2, %c0_i32_22 : i32
    %31 = arith.andi %29, %30 : i1
    %32 = arith.extui %31 : i1 to i32
    %c0_i32_23 = arith.constant 0 : i32
    %33 = arith.cmpi ne, %32, %c0_i32_23 : i32
    scf.if %33 {
      %c0_24 = arith.constant 0 : index
      %c0_25 = arith.constant 0 : index
      %34 = vector.load %arg9[%c0_24, %c0_25] : memref<128x128xf32, #tpu.memory_space<vmem>>, vector<128x128xf32>
      %c0_26 = arith.constant 0 : index
      %c0_27 = arith.constant 0 : index
      %35 = vector.load %arg8[%c0_26, %c0_27] : memref<128x128xf32, #tpu.memory_space<vmem>>, vector<128x128xf32>
      tpu.vector_store %arg8[%c0_26, %c0_27], %34 {strides = array<i32>} : memref<128x128xf32, #tpu.memory_space<vmem>>, vector<128x128xf32>,
    } else {
    }
    return
  }
  func.func @transform_0(%arg0: i32, %arg1: i32, %arg2: i32) -> (i32, i32) {
    %c0_i32 = arith.constant 0 : i32
    %c0_i32_0 = arith.constant 0 : i32
    return %arg0, %c0_i32 : i32, i32
  }
  func.func @transform_1(%arg0: i32, %arg1: i32, %arg2: i32) -> (i32, i32, i32) {
    %c0_i32 = arith.constant 0 : i32
    %c0_i32_0 = arith.constant 0 : i32
    return %arg1, %arg0, %c0_i32 : i32, i32, i32
  }
  func.func @transform_2(%arg0: i32, %arg1: i32, %arg2: i32) -> (i32, i32, i32) {
    %c0_i32 = arith.constant 0 : i32
    %c0_i32_0 = arith.constant 0 : i32
    return %arg1, %c0_i32, %arg2 : i32, i32, i32
  }
  func.func @transform_3(%arg0: i32, %arg1: i32, %arg2: i32) -> (i32, i32, i32) {
    %c0_i32 = arith.constant 0 : i32
    %c0_i32_0 = arith.constant 0 : i32
    return %arg1, %c0_i32, %arg2 : i32, i32, i32
  }
  func.func @transform_4(%arg0: i32, %arg1: i32, %arg2: i32) -> (i32, i32, i32) {
    %c0_i32 = arith.constant 0 : i32
    %c0_i32_0 = arith.constant 0 : i32
    return %arg1, %arg2, %c0_i32 : i32, i32, i32
  }
  func.func @transform_5(%arg0: i32, %arg1: i32, %arg2: i32) -> (i32, i32) {
    %c0_i32 = arith.constant 0 : i32
    %c0_i32_0 = arith.constant 0 : i32
    return %arg0, %c0_i32 : i32, i32
  }
}

</mosaic_0001>

<bundles_post_ra>
// kernel: moe_forward.1
= control target key start
LH: loop header
LB: loop body
LE: loop exit
PB: predicated region body
PF: predicated region fallthrough
CT: control target
= control target key end

     0   :  { %s1932_s18 = smov 0   ;;  %s1934_s19 = smov 0   ;;  %s2277_s0 = inlined_call_operand.vmem [shape: f32[128,128], index: 0, kind: input, shape index: {}]   ;;  %s2278_s1 = inlined_call_operand.vmem [shape: f32[4,128,1], index: 1, kind: input, shape index: {}]   ;;  %s2279_s2 = inlined_call_operand.vmem [shape: f32[4,128,128], index: 2, kind: input, shape index: {}]   ;;  %s2280_s3 = inlined_call_operand.vmem [shape: f32[4,128,128], index: 3, kind: input, shape index: {}]   ;;  %s2281_s4 = inlined_call_operand.vmem [shape: f32[4,128,128], index: 4, kind: input, shape index: {}]   ;;  %s2282_s5 = inlined_call_operand.vmem [shape: f32[128,128], index: 5, kind: output, shape index: {}]  }
   0x1   :  { %s1936_s20 = smov 0  }
   0x2 LB: > { %s30_s21 = sadd.s32 1, %s1894_s19  ;;  %p1371_p0 = scmp.ge.s32.totalorder %s1898_s20, 1  ;;  %s1898_s20 = sphi %s1936_s20, %s15_s20   ;;  %s1894_s19 = sphi %s1934_s19, %s2284_s19   ;;  %s1890_s18 = sphi %s1932_s18, %s2283_s18  }
   0x3   : > { %p32_p1 = scmp.ge.s32.totalorder %s30_s21, 4  ;;  %p271_p2 = scmp.lt.s32.totalorder %s1898_s20, 5 }
   0x5   : > { %s2286_s21 = smov (%p32_p1, %s30_s21), 0  ;;  %p272_p3 = pnand %p1371_p0, %p271_p2 }
   0x6   : > { %p340_p4 = scmp.lt.s32.totalorder (!%p272_p3), %s1890_s18, 3  ;;  %p381_p5 = scmp.eq.s32.totalorder (!%p272_p3), %s1890_s18, 0 }
   0x7   : > { %275 = sbr.rel (%p272_p3) target bundleno = 559 (0x22f), region = 40 }
   0xe   : > { %s341_s22 = scalar_select %p340_p4, %s1890_s18, 3 }
   0xf   : > { %386 = sbr.rel (!%p381_p5) target bundleno = 24 (0x18), region = 44  ;;  %v1900_v0 = vmov (%p381_p5), 0.0  }
  0x10   : > { %s1402_s23 = sshll.u32 %s341_s22, 7  ;;  %387 = vst [vmem:[#allocation2] sm:$0xff] (%p381_p5), %v1900_v0  ;;  %388 = vst [vmem:[#allocation2 + $0x8] sm:$0xff] (%p381_p5), %v1900_v0 }
  0x11   : > { %s1958_s26 = scalar_lea.vmem %s2278_s1, %s1402_s23  ;;  %s1963_s29 = scalar_lea.vmem %s2279_s2, %s1402_s23  ;;  %389 = vst [vmem:[#allocation2 + $0x10] sm:$0xff] (%p381_p5), %v1900_v0  ;;  %390 = vst [vmem:[#allocation2 + $0x18] sm:$0xff] (%p381_p5), %v1900_v0 }
  0x12   : > { %s1968_s7 = scalar_lea.vmem %s2280_s3, %s1402_s23  ;;  %s1973_s10 = scalar_lea.vmem %s2281_s4, %s1402_s23  ;;  %391 = vst [vmem:[#allocation2 + $0x20] sm:$0xff] (%p381_p5), %v1900_v0  ;;  %392 = vst [vmem:[#allocation2 + $0x28] sm:$0xff] (%p381_p5), %v1900_v0 }
  0x13   : > { %393 = vst [vmem:[#allocation2 + $0x30] sm:$0xff] (%p381_p5), %v1900_v0  ;;  %394 = vst [vmem:[#allocation2 + $0x38] sm:$0xff] (%p381_p5), %v1900_v0 }
  0x14   : > { %395 = vst [vmem:[#allocation2 + $0x40] sm:$0xff] (%p381_p5), %v1900_v0  ;;  %396 = vst [vmem:[#allocation2 + $0x48] sm:$0xff] (%p381_p5), %v1900_v0 }
  0x15   : > { %397 = vst [vmem:[#allocation2 + $0x50] sm:$0xff] (%p381_p5), %v1900_v0  ;;  %398 = vst [vmem:[#allocation2 + $0x58] sm:$0xff] (%p381_p5), %v1900_v0 }
  0x16   : > { %399 = vst [vmem:[#allocation2 + $0x60] sm:$0xff] %v1900_v0  ;;  %400 = vst [vmem:[#allocation2 + $0x68] sm:$0xff] %v1900_v0 }
  0x17   : > { %401 = vst [vmem:[#allocation2 + $0x70] sm:$0xff] %v1900_v0  ;;  %402 = vst [vmem:[#allocation2 + $0x78] sm:$0xff] %v1900_v0 }
  0x18 PF: > { %v419_v1 = vld [vmem:[%s1963_s29] sm:$0xff]  ;;  %v420_v2 = vld [vmem:[%s1963_s29 + $0x8] sm:$0xff]  ;;  %v421_v3 = vld [vmem:[%s1963_s29 + $0x10] sm:$0xff]  ;;  %v1901_v6 = vmov 0   ;;  %p1190_p6 = scmp.eq.s32.totalorder %s1890_s18, 3 }
  0x19   : > { %v1672_v4 = vpack.c.bf16 %v420_v2, %v419_v1  ;;  %v422_v5 = vld [vmem:[%s1963_s29 + $0x18] sm:$0xff]  ;;  %1811 = vset.pattern.permute.xlu1 %v1901_v6  ;;  %1810 = vset.pattern.permute.xlu0 %v1901_v6  ;;  %v423_v8 = vld [vmem:[%s1963_s29 + $0x20] sm:$0xff]  ;;  %v424_v9 = vld [vmem:[%s1963_s29 + $0x28] sm:$0xff] }
  0x1a   : > { %v1676_v7 = vpack.c.bf16 %v422_v5, %v421_v3  ;;  %v435_v10 = vld [vmem:[%s1968_s7] sm:$0xff]  ;;  %v1680_v11 = vpack.c.bf16 %v424_v9, %v423_v8  ;;  %v425_v12 = vld [vmem:[%s1963_s29 + $0x30] sm:$0xff]  ;;  %v426_v13 = vld [vmem:[%s1963_s29 + $0x38] sm:$0xff] }
  0x1b   : > { %1673 = vmatprep.subr.bf16.mxu0 %v1672_v4  ;;  %v436_v14 = vld [vmem:[%s1968_s7 + $0x8] sm:$0xff]  ;;  %v403_v16 = vld [vmem:[%s2277_s0] sm:$0xff]  ;;  %v437_v17 = vld [vmem:[%s1968_s7 + $0x10] sm:$0xff]  ;;  %v1684_v22 = vpack.c.bf16 %v426_v13, %v425_v12 }
  0x1c   : > { %1675 = vmatpush3.bf16.msra.mxu0 %v1672_v4  ;;  %v1704_v15 = vpack.c.bf16 %v436_v14, %v435_v10  ;;  %v438_v18 = vld [vmem:[%s1968_s7 + $0x18] sm:$0xff]  ;;  %1536 = vmatprep.mubr.f32.mxu0 %v403_v16  ;;  %v439_v20 = vld [vmem:[%s1968_s7 + $0x20] sm:$0xff]  ;;  %v440_v21 = vld [vmem:[%s1968_s7 + $0x28] sm:$0xff] }
  0x1d   : > { %1677 = vmatprep.subr.bf16.mxu0 %v1676_v7  ;;  %v1708_v19 = vpack.c.bf16 %v438_v18, %v437_v17  ;;  %1592 = vmatprep.mubr.f32.mxu1 %v403_v16  ;;  %v427_v23 = vld [vmem:[%s1963_s29 + $0x40] sm:$0xff]  ;;  %v428_v24 = vld [vmem:[%s1963_s29 + $0x48] sm:$0xff]  ;;  %v1712_v25 = vpack.c.bf16 %v440_v21, %v439_v20  ;;  %v441_v26 = vld [vmem:[%s1968_s7 + $0x30] sm:$0xff] }
  0x1e   : > { %1705 = vmatprep.subr.bf16.mxu1 %v1704_v15  ;;  %v442_v27 = vld [vmem:[%s1968_s7 + $0x38] sm:$0xff]  ;;  %v1688_v28 = vpack.c.bf16 %v428_v24, %v427_v23  ;;  %v429_v29 = vld [vmem:[%s1963_s29 + $0x50] sm:$0xff]  ;;  %v443_v32 = vld [vmem:[%s1968_s7 + $0x40] sm:$0xff] }
  0x1f   : > { %1707 = vmatpush3.bf16.msra.mxu1 %v1704_v15  ;;  %v430_v30 = vld [vmem:[%s1963_s29 + $0x58] sm:$0xff]  ;;  %v1716_v31 = vpack.c.bf16 %v442_v27, %v441_v26  ;;  %v444_v33 = vld [vmem:[%s1968_s7 + $0x48] sm:$0xff]  ;;  %v467_v35 = vld [vmem:[%s1958_s26] sm:$0xff] }
  0x20   : > { %1679 = vmatpush3.bf16.msra.mxu0 %v1676_v7  ;;  %1709 = vmatprep.subr.bf16.mxu1 %v1708_v19  ;;  %v468_v34 = vld [vmem:[%s1958_s26 + $0x8] sm:$0xff]  ;;  %v1692_v36 = vpack.c.bf16 %v430_v30, %v429_v29  ;;  %v431_v37 = vld [vmem:[%s1963_s29 + $0x60] sm:$0xff]  ;;  %v1720_v39 = vpack.c.bf16 %v444_v33, %v443_v32  ;;  %v445_v40 = vld [vmem:[%s1968_s7 + $0x50] sm:$0xff] }
  0x21   : > { %1681 = vmatprep.subr.bf16.mxu0 %v1680_v11  ;;  %v432_v38 = vld [vmem:[%s1963_s29 + $0x68] sm:$0xff]  ;;  %908 = vperm.xlu1 %1811, %v468_v34   ;;  %v446_v41 = vld [vmem:[%s1968_s7 + $0x58] sm:$0xff]  ;;  %v475_v43 = vld [vmem:[%s1958_s26 + $0x40] sm:$0xff] }
  0x22   : > { %903 = vperm.xlu0 %1810, %v467_v35   ;;  %v476_v42 = vld [vmem:[%s1958_s26 + $0x48] sm:$0xff]  ;;  %v1696_v44 = vpack.c.bf16 %v432_v38, %v431_v37  ;;  %v433_v45 = vld [vmem:[%s1963_s29 + $0x70] sm:$0xff]  ;;  %v434_v46 = vld [vmem:[%s1963_s29 + $0x78] sm:$0xff]  ;;  %v1724_v47 = vpack.c.bf16 %v446_v41, %v445_v40 }
  0x23   : > { %1711 = vmatpush3.bf16.msra.mxu1 %v1708_v19  ;;  %v447_v48 = vld [vmem:[%s1968_s7 + $0x60] sm:$0xff]  ;;  %v448_v49 = vld [vmem:[%s1968_s7 + $0x68] sm:$0xff]  ;;  %v477_v50 = vld [vmem:[%s1958_s26 + $0x50] sm:$0xff]  ;;  %v1700_v52 = vpack.c.bf16 %v434_v46, %v433_v45 }
  0x24   : > { %1683 = vmatpush3.bf16.msra.mxu0 %v1680_v11  ;;  %1713 = vmatprep.subr.bf16.mxu1 %v1712_v25  ;;  %v469_v51 = vld [vmem:[%s1958_s26 + $0x10] sm:$0xff]  ;;  %v1728_v53 = vpack.c.bf16 %v448_v49, %v447_v48  ;;  %v450_v55 = vld [vmem:[%s1968_s7 + $0x78] sm:$0xff]  ;;  %v479_v59 = vld [vmem:[%s1958_s26 + $0x60] sm:$0xff] }
  0x25   : > { %1685 = vmatprep.subr.bf16.mxu0 %v1684_v22  ;;  %948 = vperm.xlu1 %1811, %v476_v42   ;;  %v449_v54 = vld [vmem:[%s1968_s7 + $0x70] sm:$0xff]  ;;  %v478_v56 = vld [vmem:[%s1958_s26 + $0x58] sm:$0xff]  ;;  %v404_v60 = vld [vmem:[%s2277_s0 + $0x8] sm:$0xff] }
  0x26   : > { %943 = vperm.xlu0 %1810, %v475_v43   ;;  %v470_v57 = vld [vmem:[%s1958_s26 + $0x18] sm:$0xff]  ;;  %v1732_v58 = vpack.c.bf16 %v450_v55, %v449_v54  ;;  %v471_v61 = vld [vmem:[%s1958_s26 + $0x20] sm:$0xff]  ;;  %v405_v62 = vld [vmem:[%s2277_s0 + $0x10] sm:$0xff] }
  0x27   : > { %1715 = vmatpush3.bf16.msra.mxu1 %v1712_v25  ;;  %v480_v63 = vld [vmem:[%s1958_s26 + $0x68] sm:$0xff]  ;;  %v406_v0 = vld [vmem:[%s2277_s0 + $0x18] sm:$0xff]  ;;  %v407_v2 = vld [vmem:[%s2277_s0 + $0x20] sm:$0xff] }
  0x28   : > { %1687 = vmatpush3.bf16.msra.mxu0 %v1684_v22  ;;  %1717 = vmatprep.subr.bf16.mxu1 %v1716_v31  ;;  %v472_v1 = vld [vmem:[%s1958_s26 + $0x28] sm:$0xff]  ;;  %v481_v3 = vld [vmem:[%s1958_s26 + $0x70] sm:$0xff]  ;;  %v482_v7 = vld [vmem:[%s1958_s26 + $0x78] sm:$0xff] }
  0x29   : > { %1689 = vmatprep.subr.bf16.mxu0 %v1688_v28  ;;  %953 = vperm.xlu1 %1811, %v477_v50   ;;  %v408_v4 = vld [vmem:[%s2277_s0 + $0x28] sm:$0xff]  ;;  %v473_v5 = vld [vmem:[%s1958_s26 + $0x30] sm:$0xff]  ;;  %v410_v8 = vld [vmem:[%s2277_s0 + $0x38] sm:$0xff] }
  0x2a   : > { %913 = vperm.xlu0 %1810, %v469_v51   ;;  %v409_v6 = vld [vmem:[%s2277_s0 + $0x30] sm:$0xff]  ;;  %v474_v9 = vld [vmem:[%s1958_s26 + $0x38] sm:$0xff]  ;;  %v411_v10 = vld [vmem:[%s2277_s0 + $0x40] sm:$0xff] }
  0x2b   : > { %1719 = vmatpush3.bf16.msra.mxu1 %v1716_v31  ;;  %v412_v11 = vld [vmem:[%s2277_s0 + $0x48] sm:$0xff]  ;;  %v413_v12 = vld [vmem:[%s2277_s0 + $0x50] sm:$0xff]  ;;  %v414_v13 = vld [vmem:[%s2277_s0 + $0x58] sm:$0xff] }
  0x2c   : > { %1691 = vmatpush3.bf16.msra.mxu0 %v1688_v28  ;;  %1721 = vmatprep.subr.bf16.mxu1 %v1720_v39  ;;  %v415_v14 = vld [vmem:[%s2277_s0 + $0x60] sm:$0xff]  ;;  %v416_v15 = vld [vmem:[%s2277_s0 + $0x68] sm:$0xff]  ;;  %v417_v16 = vld [vmem:[%s2277_s0 + $0x70] sm:$0xff] }
  0x2d   : > { %1693 = vmatprep.subr.bf16.mxu0 %v1692_v36  ;;  %958 = vperm.xlu1 %1811, %v478_v56   ;;  %v418_v17 = vld [vmem:[%s2277_s0 + $0x78] sm:$0xff]  ;;  %v451_v18 = vld [vmem:[%s1973_s10] sm:$0xff]  ;;  %v452_v19 = vld [vmem:[%s1973_s10 + $0x8] sm:$0xff] }
  0x2e   : > { %918 = vperm.xlu0 %1810, %v470_v57   ;;  %v1736_v20 = vpack.c.bf16 %v452_v19, %v451_v18  ;;  %v453_v21 = vld [vmem:[%s1973_s10 + $0x10] sm:$0xff]  ;;  %v454_v22 = vld [vmem:[%s1973_s10 + $0x18] sm:$0xff]  ;;  %v455_v24 = vld [vmem:[%s1973_s10 + $0x20] sm:$0xff] }
  0x2f   : > { %1723 = vmatpush3.bf16.msra.mxu1 %v1720_v39  ;;  %v1740_v23 = vpack.c.bf16 %v454_v22, %v453_v21  ;;  %v456_v25 = vld [vmem:[%s1973_s10 + $0x28] sm:$0xff]  ;;  %v457_v27 = vld [vmem:[%s1973_s10 + $0x30] sm:$0xff]  ;;  %v458_v28 = vld [vmem:[%s1973_s10 + $0x38] sm:$0xff] }
  0x30   : > { %1695 = vmatpush3.bf16.msra.mxu0 %v1692_v36  ;;  %1725 = vmatprep.subr.bf16.mxu1 %v1724_v47  ;;  %v1744_v26 = vpack.c.bf16 %v456_v25, %v455_v24  ;;  %v1748_v29 = vpack.c.bf16 %v458_v28, %v457_v27  ;;  %v459_v30 = vld [vmem:[%s1973_s10 + $0x40] sm:$0xff]  ;;  %v460_v31 = vld [vmem:[%s1973_s10 + $0x48] sm:$0xff]  ;;  %v461_v33 = vld [vmem:[%s1973_s10 + $0x50] sm:$0xff] }
  0x31   : > { %1697 = vmatprep.subr.bf16.mxu0 %v1696_v44  ;;  %963 = vperm.xlu1 %1811, %v479_v59   ;;  %v1752_v32 = vpack.c.bf16 %v460_v31, %v459_v30  ;;  %v462_v34 = vld [vmem:[%s1973_s10 + $0x58] sm:$0xff]  ;;  %v463_v36 = vld [vmem:[%s1973_s10 + $0x60] sm:$0xff]  ;;  %v464_v37 = vld [vmem:[%s1973_s10 + $0x68] sm:$0xff] }
  0x32   : > { %923 = vperm.xlu0 %1810, %v471_v61   ;;  %v1756_v35 = vpack.c.bf16 %v462_v34, %v461_v33  ;;  %v1760_v38 = vpack.c.bf16 %v464_v37, %v463_v36  ;;  %v465_v39 = vld [vmem:[%s1973_s10 + $0x70] sm:$0xff]  ;;  %v466_v40 = vld [vmem:[%s1973_s10 + $0x78] sm:$0xff] }
  0x33   : > { %1727 = vmatpush3.bf16.msra.mxu1 %v1724_v47  ;;  %v1764_v41 = vpack.c.bf16 %v466_v40, %v465_v39 }
  0x34   : > { %1699 = vmatpush3.bf16.msra.mxu0 %v1696_v44  ;;  %1729 = vmatprep.subr.bf16.mxu1 %v1728_v53 }
  0x35   : > { %1701 = vmatprep.subr.bf16.mxu0 %v1700_v52  ;;  %968 = vperm.xlu1 %1811, %v480_v63  }
  0x36   : > { %928 = vperm.xlu0 %1810, %v472_v1  }
  0x37   : > { %1731 = vmatpush3.bf16.msra.mxu1 %v1728_v53 }
  0x38   : > { %1703 = vmatpush3.bf16.msra.mxu0 %v1700_v52  ;;  %1733 = vmatprep.subr.bf16.mxu1 %v1732_v58 }
  0x39   : > { %973 = vperm.xlu1 %1811, %v481_v3   ;;  %1737 = vmatprep.subr.bf16.mxu0 %v1736_v20 }
  0x3a   : > { %933 = vperm.xlu0 %1810, %v473_v5  }
  0x3b   : > { %1537 = vmatmul.mubr.f32.vlgmr.msra.gmra.mrb[0].mxu0 %v404_v60  ;;  %1735 = vmatpush3.bf16.msra.mxu1 %v1732_v58 }
  0x3c   : > { %1539 = vmatprep.mubr.f32.mxu0 %v405_v62  ;;  %1768 = vmatprep.subr.bf16.mxu1 %v1736_v20 }
  0x3d   : > { %978 = vperm.xlu1 %1811, %v482_v7   ;;  %1739 = vmatpush3.bf16.msra.mxu0 %v1736_v20 }
  0x3e   : > { %1593 = vmatmul.mubr.f32.vlgmr.msra.gmra.mrb[0].mxu1 %v404_v60  ;;  %938 = vperm.xlu0 %1810, %v474_v9  }
  0x3f   : > { %1540 = vmatmul.mubr.f32.gmra.mrb[2].mxu0 %v406_v0  ;;  %1595 = vmatprep.mubr.f32.mxu1 %v405_v62 }
  0x40   : > { %1542 = vmatprep.mubr.f32.mxu0 %v407_v2  ;;  %1776 = vmatpush3.bf16.msra.mxu1 %v1736_v20 }
  0x41   : > { %1741 = vmatprep.subr.bf16.mxu0 %v1740_v23  ;;  %1769 = vmatprep.subr.bf16.mxu1 %v1740_v23 }
  0x42   : > { %1596 = vmatmul.mubr.f32.gmra.mrb[2].mxu1 %v406_v0  ;;  %1743 = vmatpush3.bf16.msra.mxu0 %v1740_v23 }
  0x43   : > { %1543 = vmatmul.mubr.f32.gmra.mrb[4].mxu0 %v408_v4  ;;  %1598 = vmatprep.mubr.f32.mxu1 %v407_v2 }
  0x44   : > { %1545 = vmatprep.mubr.f32.mxu0 %v409_v6  ;;  %1777 = vmatpush3.bf16.msra.mxu1 %v1740_v23 }
  0x45   : > { %1745 = vmatprep.subr.bf16.mxu0 %v1744_v26  ;;  %1770 = vmatprep.subr.bf16.mxu1 %v1744_v26 }
  0x46   : > { %1599 = vmatmul.mubr.f32.gmra.mrb[4].mxu1 %v408_v4  ;;  %1747 = vmatpush3.bf16.msra.mxu0 %v1744_v26 }
  0x47   : > { %1546 = vmatmul.mubr.f32.gmra.mrb[6].mxu0 %v410_v8  ;;  %1601 = vmatprep.mubr.f32.mxu1 %v409_v6 }
  0x48   : > { %1548 = vmatprep.mubr.f32.mxu0 %v411_v10  ;;  %1778 = vmatpush3.bf16.msra.mxu1 %v1744_v26 }
  0x49   : > { %1749 = vmatprep.subr.bf16.mxu0 %v1748_v29  ;;  %1771 = vmatprep.subr.bf16.mxu1 %v1748_v29 }
  0x4a   : > { %1602 = vmatmul.mubr.f32.gmra.mrb[6].mxu1 %v410_v8  ;;  %1751 = vmatpush3.bf16.msra.mxu0 %v1748_v29 }
  0x4b   : > { %1549 = vmatmul.mubr.f32.gmra.mrb[8].mxu0 %v412_v11  ;;  %1604 = vmatprep.mubr.f32.mxu1 %v411_v10 }
  0x4c   : > { %1551 = vmatprep.mubr.f32.mxu0 %v413_v12  ;;  %1779 = vmatpush3.bf16.msra.mxu1 %v1748_v29 }
  0x4d   : > { %1753 = vmatprep.subr.bf16.mxu0 %v1752_v32  ;;  %1772 = vmatprep.subr.bf16.mxu1 %v1752_v32 }
  0x4e   : > { %1605 = vmatmul.mubr.f32.gmra.mrb[8].mxu1 %v412_v11  ;;  %1755 = vmatpush3.bf16.msra.mxu0 %v1752_v32 }
  0x4f   : > { %1552 = vmatmul.mubr.f32.gmra.mrb[10].mxu0 %v414_v13  ;;  %1607 = vmatprep.mubr.f32.mxu1 %v413_v12 }
  0x50   : > { %1554 = vmatprep.mubr.f32.mxu0 %v415_v14  ;;  %1780 = vmatpush3.bf16.msra.mxu1 %v1752_v32 }
  0x51   : > { %1757 = vmatprep.subr.bf16.mxu0 %v1756_v35  ;;  %1773 = vmatprep.subr.bf16.mxu1 %v1756_v35 }
  0x52   : > { %1608 = vmatmul.mubr.f32.gmra.mrb[10].mxu1 %v414_v13  ;;  %1759 = vmatpush3.bf16.msra.mxu0 %v1756_v35 }
  0x53   : > { %1555 = vmatmul.mubr.f32.gmra.mrb[12].mxu0 %v416_v15  ;;  %1610 = vmatprep.mubr.f32.mxu1 %v415_v14 }
  0x54   : > { %1557 = vmatprep.mubr.f32.mxu0 %v417_v16  ;;  %1781 = vmatpush3.bf16.msra.mxu1 %v1756_v35 }
  0x55   : > { %1761 = vmatprep.subr.bf16.mxu0 %v1760_v38  ;;  %1774 = vmatprep.subr.bf16.mxu1 %v1760_v38 }
  0x56   : > { %1611 = vmatmul.mubr.f32.gmra.mrb[12].mxu1 %v416_v15  ;;  %1763 = vmatpush3.bf16.msra.mxu0 %v1760_v38 }
  0x57   : > { %1558 = vmatmul.mubr.f32.gmra.mrb[14].mxu0 %v418_v17  ;;  %1613 = vmatprep.mubr.f32.mxu1 %v417_v16 }
  0x58   : > { %1782 = vmatpush3.bf16.msra.mxu1 %v1760_v38  ;;  %1765 = vmatprep.subr.bf16.mxu0 %v1764_v41 }
  0x59   : > { %1775 = vmatprep.subr.bf16.mxu1 %v1764_v41 }
  0x5a   : > { %1614 = vmatmul.mubr.f32.gmra.mrb[14].mxu1 %v418_v17  ;;  %1767 = vmatpush3.bf16.msra.mxu0 %v1764_v41 }
  0x5c   : > { %1783 = vmatpush3.bf16.msra.mxu1 %v1764_v41 }
  0xa0   : > { %v909_v17 = vpop.permute.xlu1 %908 }
  0xa1   : > { %v2093_v46 = vpop.permute.xlu0 %903 }
  0xa4   : > { %v2158_v35 = vpop.permute.xlu1 %948 }
  0xa5   : > { %v2112_v57 = vpop.permute.xlu0 %943 }
  0xa9   : > { %v2127_v6 = vpop.permute.xlu0 %913 }
  0xad   : > { %v2146_v25 = vpop.permute.xlu0 %918 }
 0x10e   : > { %v2087_v42 = vpop.f32.mrb[0].mxu0 }
 0x10f   : > { %v1382_v43 = vmul.f32 -1.442695, %v2087_v42  ;;  %v2090_v44 = vpop.f32.mrb[1].mxu0 }
 0x110   : > { %v1381_v45 = vmul.f32 -1.442695, %v2090_v44 }
 0x111   : > { %1812 = vpow2.f32 %v1382_v43  ;;  %v2100_v50 = vpop.f32.mrb[0].mxu1 }
 0x112   : > { %1814 = vpow2.f32 %v1381_v45  ;;  %v2095_v47 = vpop.f32.mrb[2].mxu0  ;;  %v2103_v52 = vpop.f32.mrb[1].mxu1 }
 0x113   : > { %v1384_v48 = vmul.f32 -1.442695, %v2095_v47  ;;  %v2098_v49 = vpop.f32.mrb[3].mxu0  ;;  %v924_v45 = vpop.permute.xlu0 %923 }
 0x114   : > { %v1383_v51 = vmul.f32 -1.442695, %v2098_v49 }
 0x115   : > { %1816 = vpow2.f32 %v1384_v48  ;;  %v2110_v56 = vpop.f32.mrb[2].mxu1 }
 0x116   : > { %1818 = vpow2.f32 %v1383_v51  ;;  %v2105_v53 = vpop.f32.mrb[4].mxu0  ;;  %v2115_v59 = vpop.f32.mrb[3].mxu1 }
 0x117   : > { %v1386_v54 = vmul.f32 -1.442695, %v2105_v53  ;;  %v2108_v55 = vpop.f32.mrb[5].mxu0 }
 0x118   : > { %v1385_v58 = vmul.f32 -1.442695, %v2108_v55 }
 0x119   : > { %1820 = vpow2.f32 %v1386_v54  ;;  %v2122_v0 = vpop.f32.mrb[4].mxu1 }
 0x11a   : > { %1822 = vpow2.f32 %v1385_v58  ;;  %v2117_v60 = vpop.f32.mrb[6].mxu0  ;;  %v2125_v4 = vpop.f32.mrb[5].mxu1 }
 0x11b   : > { %v1813_v61 = vpop.eup %1812  ;;  %v1388_v62 = vmul.f32 -1.442695, %v2117_v60  ;;  %v2120_v63 = vpop.f32.mrb[7].mxu0 }
 0x11c   : > { %v1815_v1 = vpop.eup %1814  ;;  %v677_v2 = vadd.f32 1.0, %v1813_v61  ;;  %v1387_v3 = vmul.f32 -1.442695, %v2120_v63 }
 0x11d   : > { %v676_v5 = vadd.f32 1.0, %v1815_v1  ;;  %1824 = vpow2.f32 %v1388_v62  ;;  %v2134_v11 = vpop.f32.mrb[6].mxu1 }
 0x11e   : > { %1826 = vrcp.f32 %v677_v2  ;;  %v2129_v7 = vpop.f32.mrb[8].mxu0  ;;  %v2137_v15 = vpop.f32.mrb[7].mxu1 }
 0x11f   : > { %v1817_v8 = vpop.eup %1816  ;;  %1828 = vrcp.f32 %v676_v5  ;;  %v1390_v9 = vmul.f32 -1.442695, %v2129_v7  ;;  %v2132_v10 = vpop.f32.mrb[9].mxu0 }
 0x120   : > { %v1819_v12 = vpop.eup %1818  ;;  %v679_v13 = vadd.f32 1.0, %v1817_v8  ;;  %1830 = vpow2.f32 %v1387_v3  ;;  %v1389_v14 = vmul.f32 -1.442695, %v2132_v10 }
 0x121   : > { %v678_v16 = vadd.f32 1.0, %v1819_v12  ;;  %1832 = vpow2.f32 %v1390_v9  ;;  %v2144_v22 = vpop.f32.mrb[8].mxu1 }
 0x122   : > { %1834 = vrcp.f32 %v679_v13  ;;  %v2139_v18 = vpop.f32.mrb[10].mxu0  ;;  %v2149_v27 = vpop.f32.mrb[9].mxu1 }
 0x123   : > { %v1821_v19 = vpop.eup %1820  ;;  %1836 = vrcp.f32 %v678_v16  ;;  %v1392_v20 = vmul.f32 -1.442695, %v2139_v18  ;;  %v2142_v21 = vpop.f32.mrb[11].mxu0 }
 0x124   : > { %v1823_v23 = vpop.eup %1822  ;;  %v681_v24 = vadd.f32 1.0, %v1821_v19  ;;  %1838 = vpow2.f32 %v1389_v14  ;;  %v1391_v26 = vmul.f32 -1.442695, %v2142_v21  ;;  %v2179_v13 = vpop.permute.xlu1 %953 }
 0x125   : > { %v680_v28 = vadd.f32 1.0, %v1823_v23  ;;  %1840 = vpow2.f32 %v1392_v20  ;;  %v2156_v33 = vpop.f32.mrb[10].mxu1 }
 0x126   : > { %1842 = vrcp.f32 %v681_v24  ;;  %v2151_v29 = vpop.f32.mrb[12].mxu0  ;;  %v2161_v38 = vpop.f32.mrb[11].mxu1 }
 0x127   : > { %v1825_v30 = vpop.eup %1824  ;;  %1844 = vrcp.f32 %v680_v28  ;;  %v1394_v31 = vmul.f32 -1.442695, %v2151_v29  ;;  %v2154_v32 = vpop.f32.mrb[13].mxu0 }
 0x128   : > { %v1827_v34 = vpop.eup %1826  ;;  %v683_v36 = vadd.f32 1.0, %v1825_v30  ;;  %1846 = vpow2.f32 %v1391_v26  ;;  %v1393_v37 = vmul.f32 -1.442695, %v2154_v32 }
 0x129   : > { %v1829_v39 = vpop.eup %1828  ;;  %v725_v40 = vmul.f32 %v1827_v34, %v2087_v42  ;;  %1848 = vpow2.f32 %v1394_v31  ;;  %v2171_v1 = vpop.f32.mrb[12].mxu1 }
 0x12a   : > { %v1831_v41 = vpop.eup %1830  ;;  %v724_v43 = vmul.f32 %v1829_v39, %v2090_v44  ;;  %1850 = vrcp.f32 %v683_v36  ;;  %v2165_v48 = vpop.f32.mrb[14].mxu0 }
 0x12b   : > { %v1833_v51 = vpop.eup %1832  ;;  %v682_v54 = vadd.f32 1.0, %v1831_v41  ;;  %1852 = vpow2.f32 %v1393_v37  ;;  %v886_v58 = vmul.f32 %v2100_v50, %v725_v40  ;;  %v1396_v61 = vmul.f32 -1.442695, %v2165_v48  ;;  %v2169_v62 = vpop.f32.mrb[15].mxu0 }
 0x12c   : > { %v1835_v42 = vpop.eup %1834  ;;  %v685_v2 = vadd.f32 1.0, %v1833_v51  ;;  %v885_v3 = vmul.f32 %v2103_v52, %v724_v43  ;;  %v1395_v44 = vmul.f32 -1.442695, %v2169_v62  ;;  %v2175_v5 = vpop.f32.mrb[13].mxu1 }
 0x12d   : > { %v1837_v8 = vpop.eup %1836  ;;  %v727_v9 = vmul.f32 %v1835_v42, %v2095_v47  ;;  %1854 = vrcp.f32 %v682_v54  ;;  %v982_v20 = vmul.f32 %v909_v17, %v886_v58  ;;  %v2183_v23 = vpop.f32.mrb[14].mxu1 }
 0x12e   : > { %v1839_v12 = vpop.eup %1838  ;;  %v726_v50 = vmul.f32 %v1837_v8, %v2098_v49  ;;  %1856 = vrcp.f32 %v685_v2  ;;  %v981_v14 = vmul.f32 %v2093_v46, %v885_v3  ;;  %v929_v47 = vpop.permute.xlu0 %928 }
 0x12f   : > { %v1841_v16 = vpop.eup %1840  ;;  %v684_v19 = vadd.f32 1.0, %v1839_v12  ;;  %1858 = vpow2.f32 %v1396_v61  ;;  %v888_v52 = vmul.f32 %v2110_v56, %v727_v9  ;;  %v2186_v49 = vpop.f32.mrb[15].mxu1 }
 0x130   : > { %v1843_v24 = vpop.eup %1842  ;;  %v687_v26 = vadd.f32 1.0, %v1841_v16  ;;  %1860 = vpow2.f32 %v1395_v44  ;;  %v887_v28 = vmul.f32 %v2115_v59, %v726_v50  ;;  %1648 = vmatprep.mubr.f32.mxu0 %v981_v14  ;;  %v959_v40 = vpop.permute.xlu1 %958 }
 0x131   : > { %v1845_v30 = vpop.eup %1844  ;;  %v729_v46 = vmul.f32 %v1843_v24, %v2105_v53  ;;  %1862 = vrcp.f32 %v684_v19  ;;  %1649 = vmatmul.mubr.f32.vlgmr.msra.gmra.mrb[16].mxu0 %v982_v20  ;;  %v984_v37 = vmul.f32 %v2146_v25, %v888_v52 }
 0x132   : > { %v1847_v17 = vpop.eup %1846  ;;  %v728_v31 = vmul.f32 %v1845_v30, %v2108_v55  ;;  %1864 = vrcp.f32 %v687_v26  ;;  %v983_v56 = vmul.f32 %v2127_v6, %v887_v28  ;;  %v934_v6 = vpop.permute.xlu0 %933 }
 0x133   : > { %v1849_v34 = vpop.eup %1848  ;;  %v686_v36 = vadd.f32 1.0, %v1847_v17  ;;  %v890_v59 = vmul.f32 %v2122_v0, %v729_v46 }
 0x134   : > { %v1851_v39 = vpop.eup %1850  ;;  %v689_v41 = vadd.f32 1.0, %v1849_v34  ;;  %v889_v43 = vmul.f32 %v2125_v4, %v728_v31  ;;  %1651 = vmatprep.mubr.f32.mxu0 %v983_v56  ;;  %v964_v3 = vpop.permute.xlu1 %963 }
 0x135   : > { %v1853_v53 = vpop.eup %1852  ;;  %v731_v51 = vmul.f32 %v1851_v39, %v2117_v60  ;;  %1866 = vrcp.f32 %v686_v36  ;;  %1652 = vmatmul.mubr.f32.gmra.mrb[18].mxu0 %v984_v37  ;;  %v986_v61 = vmul.f32 %v929_v47, %v890_v59  ;;  %v998_v36 = vld [vmem:[#allocation2 + $0x8] sm:$0xff]  ;;  %v997_v37 = vld [vmem:[#allocation2] sm:$0xff] }
 0x136   : > { %1868 = vrcp.f32 %v689_v41  ;;  %v688_v55 = vadd.f32 1.0, %v1853_v53  ;;  %v985_v54 = vmul.f32 %v924_v45, %v889_v43  ;;  %v999_v41 = vld [vmem:[#allocation2 + $0x10] sm:$0xff] }
 0x137   : > { %v1855_v58 = vpop.eup %1854  ;;  %v892_v25 = vmul.f32 %v2134_v11, %v731_v51  ;;  %v1002_v51 = vld [vmem:[#allocation2 + $0x28] sm:$0xff] }
 0x138   : > { %v1857_v0 = vpop.eup %1856  ;;  %v730_v42 = vmul.f32 %v1855_v58, %v2120_v63  ;;  %1870 = vrcp.f32 %v688_v55  ;;  %1654 = vmatprep.mubr.f32.mxu0 %v985_v54  ;;  %v939_v63 = vpop.permute.xlu0 %938  ;;  %v1001_v55 = vld [vmem:[#allocation2 + $0x20] sm:$0xff] }
 0x139   : > { %v1859_v4 = vpop.eup %1858  ;;  %v733_v2 = vmul.f32 %v1857_v0, %v2129_v7  ;;  %1655 = vmatmul.mubr.f32.gmra.mrb[20].mxu0 %v986_v61  ;;  %v988_v7 = vmul.f32 %v939_v63, %v892_v25  ;;  %v969_v24 = vpop.permute.xlu1 %968  ;;  %v1004_v25 = vld [vmem:[#allocation2 + $0x38] sm:$0xff]  ;;  %v1003_v0 = vld [vmem:[#allocation2 + $0x30] sm:$0xff] }
 0x13a   : > { %v1861_v60 = vpop.eup %1860  ;;  %v691_v44 = vadd.f32 1.0, %v1859_v4  ;;  %v891_v8 = vmul.f32 %v2137_v15, %v730_v42 }
 0x13b   : > { %v1863_v9 = vpop.eup %1862  ;;  %v690_v45 = vadd.f32 1.0, %v1861_v60  ;;  %v894_v12 = vmul.f32 %v2144_v22, %v733_v2 }
 0x13c   : > { %v1865_v50 = vpop.eup %1864  ;;  %v732_v11 = vmul.f32 %v1863_v9, %v2132_v10  ;;  %1872 = vrcp.f32 %v691_v44  ;;  %v987_v14 = vmul.f32 %v934_v6, %v891_v8  ;;  %v1005_v44 = vld [vmem:[#allocation2 + $0x40] sm:$0xff] }
 0x13d   : > { %v735_v16 = vmul.f32 %v1865_v50, %v2139_v18  ;;  %1874 = vrcp.f32 %v690_v45  ;;  %v990_v47 = vmul.f32 %v2158_v35, %v894_v12  ;;  %v1008_v50 = vld [vmem:[#allocation2 + $0x58] sm:$0xff] }
 0x13e   : > { %v893_v19 = vmul.f32 %v2149_v27, %v732_v11  ;;  %1657 = vmatprep.mubr.f32.mxu0 %v987_v14  ;;  %v1007_v11 = vld [vmem:[#allocation2 + $0x50] sm:$0xff] }
 0x13f   : > { %v1867_v20 = vpop.eup %1866  ;;  %v896_v15 = vmul.f32 %v2156_v33, %v735_v16  ;;  %1658 = vmatmul.mubr.f32.gmra.mrb[22].mxu0 %v988_v7 }
 0x140   : > { %v1869_v52 = vpop.eup %1868  ;;  %v734_v22 = vmul.f32 %v1867_v20, %v2142_v21  ;;  %v989_v10 = vmul.f32 %v2112_v57, %v893_v19  ;;  %v974_v57 = vpop.permute.xlu1 %973  ;;  %v1010_v19 = vld [vmem:[#allocation2 + $0x68] sm:$0xff]  ;;  %v1009_v20 = vld [vmem:[#allocation2 + $0x60] sm:$0xff] }
 0x141   : > { %v737_v26 = vmul.f32 %v1869_v52, %v2151_v29  ;;  %v992_v46 = vmul.f32 %v959_v40, %v896_v15 }
 0x142   : > { %v1871_v18 = vpop.eup %1870  ;;  %v895_v28 = vmul.f32 %v2161_v38, %v734_v22  ;;  %1660 = vmatprep.mubr.f32.mxu1 %v989_v10  ;;  %v1012_v10 = vld [vmem:[#allocation2 + $0x78] sm:$0xff] }
 0x143   : > { %v736_v27 = vmul.f32 %v1871_v18, %v2154_v32  ;;  %v898_v30 = vmul.f32 %v2171_v1, %v737_v26  ;;  %1661 = vmatmul.mubr.f32.vlgmr.msra.gmra.mrb[16].mxu1 %v990_v47  ;;  %v1011_v26 = vld [vmem:[#allocation2 + $0x70] sm:$0xff] }
 0x144   : > { %v991_v33 = vmul.f32 %v2179_v13, %v895_v28  ;;  %v979_v56 = vpop.permute.xlu1 %978 }
 0x145   : > { %v897_v21 = vmul.f32 %v2175_v5, %v736_v27  ;;  %v994_v32 = vmul.f32 %v969_v24, %v898_v30 }
 0x146   : > { %v1873_v17 = vpop.eup %1872  ;;  %1663 = vmatprep.mubr.f32.mxu1 %v991_v33 }
 0x147   : > { %v1875_v29 = vpop.eup %1874  ;;  %v739_v35 = vmul.f32 %v1873_v17, %v2165_v48  ;;  %v993_v31 = vmul.f32 %v964_v3, %v897_v21  ;;  %1664 = vmatmul.mubr.f32.gmra.mrb[18].mxu1 %v992_v46  ;;  %v1006_v3 = vld [vmem:[#allocation2 + $0x48] sm:$0xff] }
 0x148   : > { %v738_v38 = vmul.f32 %v1875_v29, %v2169_v62  ;;  %v1000_v62 = vld [vmem:[#allocation2 + $0x18] sm:$0xff] }
 0x149   : > { %v900_v1 = vmul.f32 %v2183_v23, %v739_v35  ;;  %1666 = vmatprep.mubr.f32.mxu1 %v993_v31 }
 0x14a   : > { %v899_v13 = vmul.f32 %v2186_v49, %v738_v38 }
 0x14b   : > { %1667 = vmatmul.mubr.f32.gmra.mrb[20].mxu1 %v994_v32  ;;  %v996_v34 = vmul.f32 %v979_v56, %v900_v1 }
 0x14c   : > { %v995_v5 = vmul.f32 %v974_v57, %v899_v13 }
 0x14e   : > { %1669 = vmatprep.mubr.f32.mxu1 %v995_v5 }
 0x14f   : > { %1670 = vmatmul.mubr.f32.gmra.mrb[22].mxu1 %v996_v34 }
 0x204   : > { %v1650_v48 = vpop.f32.mrb[16].mxu0 }
 0x205   : > { %v1159_v59 = vadd.f32 %v1650_v48, %v998_v36  ;;  %v1079_v39 = vpop.f32.mrb[17].mxu0 }
 0x206   : > { %v1158_v40 = vadd.f32 %v1079_v39, %v997_v37 }
 0x207   : > { %1175 = vst [vmem:[#allocation2 + $0x8] sm:$0xff] %v1159_v59 }
 0x208   : > { %1174 = vst [vmem:[#allocation2] sm:$0xff] %v1158_v40  ;;  %v1653_v23 = vpop.f32.mrb[18].mxu0 }
 0x209   : > { %v1161_v43 = vadd.f32 %v1653_v23, %v1000_v62  ;;  %v1089_v49 = vpop.f32.mrb[19].mxu0 }
 0x20a   : > { %v1160_v53 = vadd.f32 %v1089_v49, %v999_v41 }
 0x20b   : > { %1177 = vst [vmem:[#allocation2 + $0x18] sm:$0xff] %v1161_v43 }
 0x20c   : > { %1176 = vst [vmem:[#allocation2 + $0x10] sm:$0xff] %v1160_v53  ;;  %v1656_v6 = vpop.f32.mrb[20].mxu0 }
 0x20d   : > { %v1163_v54 = vadd.f32 %v1656_v6, %v1002_v51  ;;  %v1099_v58 = vpop.f32.mrb[21].mxu0 }
 0x20e   : > { %v1162_v61 = vadd.f32 %v1099_v58, %v1001_v55  ;;  %v1196_v33 = vld [vmem:[#allocation2 + $0x8] sm:$0xff] (%p1190_p6) }
 0x20f   : > { %1179 = vst [vmem:[#allocation2 + $0x28] sm:$0xff] %v1163_v54  ;;  %v1195_v30 = vld [vmem:[#allocation2] sm:$0xff] (%p1190_p6)  ;;  %1212 = vst [vmem:[%s2282_s5 + $0x8] sm:$0xff] (%p1190_p6), %v1196_v33 }
 0x210   : > { %1178 = vst [vmem:[#allocation2 + $0x20] sm:$0xff] %v1162_v61  ;;  %1211 = vst [vmem:[%s2282_s5] sm:$0xff] (%p1190_p6), %v1195_v30 }
 0x212   : > { %v1659_v42 = vpop.f32.mrb[22].mxu0  ;;  %v1198_v21 = vld [vmem:[#allocation2 + $0x18] sm:$0xff] (%p1190_p6) }
 0x213   : > { %v1165_v4 = vadd.f32 %v1659_v42, %v1004_v25  ;;  %v1109_v2 = vpop.f32.mrb[23].mxu0  ;;  %v1197_v46 = vld [vmem:[#allocation2 + $0x10] sm:$0xff] (%p1190_p6)  ;;  %1214 = vst [vmem:[%s2282_s5 + $0x18] sm:$0xff] (%p1190_p6), %v1198_v21 }
 0x214   : > { %v1164_v60 = vadd.f32 %v1109_v2, %v1003_v0  ;;  %1213 = vst [vmem:[%s2282_s5 + $0x10] sm:$0xff] (%p1190_p6), %v1197_v46 }
 0x215   : > { %1181 = vst [vmem:[#allocation2 + $0x38] sm:$0xff] %v1165_v4 }
 0x216   : > { %1180 = vst [vmem:[#allocation2 + $0x30] sm:$0xff] %v1164_v60  ;;  %v1662_v8 = vpop.f32.mrb[16].mxu1  ;;  %v1200_v57 = vld [vmem:[#allocation2 + $0x28] sm:$0xff] (%p1190_p6) }
 0x217   : > { %v1167_v9 = vadd.f32 %v1662_v8, %v1006_v3  ;;  %v1119_v45 = vpop.f32.mrb[17].mxu1  ;;  %v1199_v17 = vld [vmem:[#allocation2 + $0x20] sm:$0xff] (%p1190_p6)  ;;  %1216 = vst [vmem:[%s2282_s5 + $0x28] sm:$0xff] (%p1190_p6), %v1200_v57 }
 0x218   : > { %v1166_v12 = vadd.f32 %v1119_v45, %v1005_v44  ;;  %1215 = vst [vmem:[%s2282_s5 + $0x20] sm:$0xff] (%p1190_p6), %v1199_v17 }
 0x219   : > { %1183 = vst [vmem:[#allocation2 + $0x48] sm:$0xff] %v1167_v9 }
 0x21a   : > { %1182 = vst [vmem:[#allocation2 + $0x40] sm:$0xff] %v1166_v12  ;;  %v1665_v63 = vpop.f32.mrb[18].mxu1 }
 0x21b   : > { %v1169_v14 = vadd.f32 %v1665_v63, %v1008_v50  ;;  %v1129_v16 = vpop.f32.mrb[19].mxu1 }
 0x21c   : > { %v1168_v7 = vadd.f32 %v1129_v16, %v1007_v11  ;;  %v1202_v35 = vld [vmem:[#allocation2 + $0x38] sm:$0xff] (%p1190_p6) }
 0x21d   : > { %1185 = vst [vmem:[#allocation2 + $0x58] sm:$0xff] %v1169_v14  ;;  %v1201_v29 = vld [vmem:[#allocation2 + $0x30] sm:$0xff] (%p1190_p6)  ;;  %1218 = vst [vmem:[%s2282_s5 + $0x38] sm:$0xff] (%p1190_p6), %v1202_v35 }
 0x21e   : > { %1184 = vst [vmem:[#allocation2 + $0x50] sm:$0xff] %v1168_v7  ;;  %v1668_v15 = vpop.f32.mrb[20].mxu1  ;;  %1217 = vst [vmem:[%s2282_s5 + $0x30] sm:$0xff] (%p1190_p6), %v1201_v29 }
 0x21f   : > { %v1171_v52 = vadd.f32 %v1668_v15, %v1010_v19  ;;  %v1139_v22 = vpop.f32.mrb[21].mxu1 }
 0x220   : > { %v1170_v24 = vadd.f32 %v1139_v22, %v1009_v20  ;;  %1194 = sbr.rel (!%p1190_p6) target bundleno = 559 (0x22f), region = 48  ;;  %v1204_v38 = vld [vmem:[#allocation2 + $0x48] sm:$0xff] (%p1190_p6) }
 0x221   : > { %1187 = vst [vmem:[#allocation2 + $0x68] sm:$0xff] %v1171_v52  ;;  %v1203_v31 = vld [vmem:[#allocation2 + $0x40] sm:$0xff] (%p1190_p6)  ;;  %1220 = vst [vmem:[%s2282_s5 + $0x48] sm:$0xff] (%p1190_p6), %v1204_v38 }
 0x222   : > { %1186 = vst [vmem:[#allocation2 + $0x60] sm:$0xff] %v1170_v24  ;;  %v1671_v47 = vpop.f32.mrb[22].mxu1  ;;  %1219 = vst [vmem:[%s2282_s5 + $0x40] sm:$0xff] (%p1190_p6), %v1203_v31 }
 0x223   : > { %v1173_v18 = vadd.f32 %v1671_v47, %v1012_v10  ;;  %v1149_v28 = vpop.f32.mrb[23].mxu1 }
 0x224   : > { %v1172_v27 = vadd.f32 %v1149_v28, %v1011_v26  ;;  %v1206_v1 = vld [vmem:[#allocation2 + $0x58] sm:$0xff] (%p1190_p6) }
 0x225   : > { %1189 = vst [vmem:[#allocation2 + $0x78] sm:$0xff] %v1173_v18  ;;  %v1205_v32 = vld [vmem:[#allocation2 + $0x50] sm:$0xff] (%p1190_p6)  ;;  %1222 = vst [vmem:[%s2282_s5 + $0x58] sm:$0xff] (%p1190_p6), %v1206_v1 }
 0x226   : > { %1188 = vst [vmem:[#allocation2 + $0x70] sm:$0xff] %v1172_v27  ;;  %1221 = vst [vmem:[%s2282_s5 + $0x50] sm:$0xff] (%p1190_p6), %v1205_v32 }
 0x228   : > { %v1208_v56 = vld [vmem:[#allocation2 + $0x68] sm:$0xff] }
 0x229   : > { %v1207_v13 = vld [vmem:[#allocation2 + $0x60] sm:$0xff]  ;;  %1224 = vst [vmem:[%s2282_s5 + $0x68] sm:$0xff] %v1208_v56 }
 0x22a   : > { %1223 = vst [vmem:[%s2282_s5 + $0x60] sm:$0xff] %v1207_v13 }
 0x22c   : > { %v1210_v34 = vld [vmem:[#allocation2 + $0x78] sm:$0xff] }
 0x22d   : > { %v1209_v5 = vld [vmem:[#allocation2 + $0x70] sm:$0xff]  ;;  %1226 = vst [vmem:[%s2282_s5 + $0x78] sm:$0xff] %v1210_v34 }
 0x22e   : > { %1225 = vst [vmem:[%s2282_s5 + $0x70] sm:$0xff] %v1209_v5 }
 0x22f PF: > { %s15_s20 = sadd.s32 1, %s1898_s20   ;;  %s2283_s18 = smov %s1894_s19 }
 0x230   : > { %p12_p7 = scmp.ge.s32.totalorder %s15_s20, 6   ;;  %s2284_s19 = smov %s2286_s21 }
 0x232   :  { %14 = sbr.rel (!%p12_p7) target bundleno = 2 (0x2), region = 90 }

</bundles_post_ra>
